<compile_context>
chip_gen: v5e
topology: v5e:2x2
jax: 0.10.0
libtpu: 0.0.40
codegen_flags: <defaults>
</compile_context>

<pallas_src>
import functools

import jax
import jax.numpy as jnp
from jax.experimental import pallas as pl
from jax.experimental.pallas import tpu as pltpu

H1 = 64            # fc1 output features
H2 = 32            # fc2 output features
LANES = 128        # packed-parameter buffer width
BIAS_COL = LANES - 1   # spare lane column holding the bias vectors


def _round_up(x, m):
    return ((x + m - 1) // m) * m


def _cdiv(a, b):
    return -(-a // b)


# --------------------------------------------------------------------------
# Parameter packing: one (rows, 128) f32 buffer, everything transposed
# (feature-major).  Row blocks:
#   rows [0, 64)            : W1^T (64, k1) in cols [0, k1),  b1 in col BIAS_COL
#   rows [64, 96)           : W2^T (32, 64) in cols [0, 64),  b2 in col BIAS_COL
#   rows [96, 96 + nc_pad)  : W3^T (nc, 32) in cols [0, 32),  b3 in col BIAS_COL
# --------------------------------------------------------------------------
def _pack_params(params, k1, nc_pad):
    f32 = jnp.float32
    r_w1, r_w2, r_w3 = 0, H1, H1 + H2
    p_rows = H1 + H2 + nc_pad            # multiple of 8

    w1t = params["w1"].astype(f32).T     # (64, input_dim)
    w2t = params["w2"].astype(f32).T     # (32, 64)
    w3t = params["w3"].astype(f32).T     # (num_classes, 32)
    b1 = params["b1"].astype(f32).reshape(-1)   # (64,)
    b2 = params["b2"].astype(f32).reshape(-1)   # (32,)
    b3 = params["b3"].astype(f32).reshape(-1)   # (num_classes,)

    packed = jnp.zeros((p_rows, LANES), f32)
    packed = packed.at[r_w1:r_w1 + w1t.shape[0], 0:w1t.shape[1]].set(w1t)
    packed = packed.at[r_w2:r_w2 + w2t.shape[0], 0:w2t.shape[1]].set(w2t)
    packed = packed.at[r_w3:r_w3 + w3t.shape[0], 0:w3t.shape[1]].set(w3t)
    packed = packed.at[r_w1:r_w1 + b1.shape[0], BIAS_COL].set(b1)
    packed = packed.at[r_w2:r_w2 + b2.shape[0], BIAS_COL].set(b2)
    packed = packed.at[r_w3:r_w3 + b3.shape[0], BIAS_COL].set(b3)
    return packed, (r_w1, r_w2, r_w3)


# --------------------------------------------------------------------------
# Kernel (feature-major: h^T = W^T @ h_prev^T, batch on the lane axis).
# Static sizes/offsets are closed over; traced once per shape configuration.
# --------------------------------------------------------------------------
def _make_kernel(k1, nc_pad, r_w1, r_w2, r_w3):
    def kernel(x_ref, p_ref, o_ref):
        xT = x_ref[...]                                          # (k1, tb)

        # ---- fc1 + ReLU (MXU, K = k1, N = tb full-lane) ------------------
        w1t = p_ref[r_w1:r_w1 + H1, 0:k1]                        # (64, k1)
        b1 = p_ref[r_w1:r_w1 + H1, BIAS_COL:BIAS_COL + 1]        # (64, 1)
        h1 = jnp.maximum(
            jnp.dot(w1t, xT, preferred_element_type=jnp.float32) + b1, 0.0)

        # ---- fc2 + ReLU (MXU) --------------------------------------------
        w2t = p_ref[r_w2:r_w2 + H2, 0:H1]                        # (32, 64)
        b2 = p_ref[r_w2:r_w2 + H2, BIAS_COL:BIAS_COL + 1]        # (32, 1)
        h2 = jnp.maximum(
            jnp.dot(w2t, h1, preferred_element_type=jnp.float32) + b2, 0.0)

        # ---- fc3 (MXU), narrow 8-aligned output (no 128-lane slab) -------
        w3t = p_ref[r_w3:r_w3 + nc_pad, 0:H2]                    # (nc_pad, 32)
        b3 = p_ref[r_w3:r_w3 + nc_pad, BIAS_COL:BIAS_COL + 1]    # (nc_pad, 1)
        out = jnp.dot(w3t, h2, preferred_element_type=jnp.float32) + b3
        o_ref[...] = out.astype(o_ref.dtype)                     # (nc_pad, tb)

    return kernel


# --------------------------------------------------------------------------
# Wrapper (jitted: packing, padding, pallas_call, slice+transpose fuse).
# --------------------------------------------------------------------------
@functools.partial(jax.jit, static_argnums=(2,))
def _forward_impl(x, params, batch_tile):
    x = x.astype(jnp.float32)
    batch, input_dim = x.shape
    num_classes = params["w3"].shape[1]
    assert params["w1"].shape[0] == input_dim and params["w1"].shape[1] == H1
    assert input_dim <= 120, "packed-parameter layout assumes input_dim <= 120"

    k1 = _round_up(input_dim, 8)          # 8-padded contraction for fc1
    nc_pad = _round_up(num_classes, 8)    # 8-aligned output rows

    packed, (r_w1, r_w2, r_w3) = _pack_params(params, k1, nc_pad)
    p_rows = packed.shape[0]

    # Adaptive batch tiling: tb is a multiple of 128 (lane dim); keep the
    # number of grid steps even (when > 1) so v7x's two TensorCores get an
    # equal share under dimension_semantics=("parallel",).
    n_steps = max(1, _cdiv(batch, batch_tile))
    if n_steps > 1 and n_steps % 2:
        n_steps += 1
    tb = _round_up(_cdiv(batch, n_steps), 128)
    padded_batch = tb * n_steps

    # Feature-major input: (k1, padded_batch), zero-padded rows/columns.
    xT = jnp.zeros((k1, padded_batch), jnp.float32)
    xT = xT.at[:input_dim, :batch].set(x.T)

    kernel = _make_kernel(k1, nc_pad, r_w1, r_w2, r_w3)

    flops = 2 * padded_batch * (k1 * H1 + H1 * H2 + H2 * nc_pad)
    bytes_accessed = (k1 * padded_batch * 4          # x^T
                      + p_rows * LANES * 4           # resident packed params
                      + nc_pad * padded_batch * 4)   # out^T

    out_t = pl.pallas_call(
        kernel,
        out_shape=jax.ShapeDtypeStruct((nc_pad, padded_batch), jnp.float32),
        grid=(n_steps,),
        in_specs=[
            pl.BlockSpec((k1, tb), lambda i: (0, i)),          # batch-tiled x^T
            pl.BlockSpec((p_rows, LANES), lambda i: (0, 0)),   # resident params
        ],
        out_specs=pl.BlockSpec((nc_pad, tb), lambda i: (0, i)),
        compiler_params=pltpu.CompilerParams(
            dimension_semantics=("parallel",)),
        cost_estimate=pl.CostEstimate(
            flops=flops, transcendentals=0, bytes_accessed=bytes_accessed),
    )(xT, packed)

    # Tiny (num_classes, batch) slice + transpose, fused inside the jit.
    return out_t[:num_classes, :batch].T


def color_classifier_forward(x, params, *, batch_tile=8192):
    """x: (batch, input_dim) float32. params: dict of w1,b1,w2,b2,w3,b3 with
    weights stored (in_features, out_features)."""
    return _forward_impl(x, params, batch_tile)


# --------------------------------------------------------------------------
# Params init (PyTorch nn.Linear default: U(-1/sqrt(fan_in), 1/sqrt(fan_in)))
# --------------------------------------------------------------------------
def init_params(key, input_dim, num_classes):
    def linear(k, fan_in, fan_out):
        kw, kb = jax.random.split(k)
        bound = 1.0 / jnp.sqrt(float(fan_in))
        # Stored (in, out): forward computes x @ W (transpose of PyTorch layout).
        w = jax.random.uniform(kw, (fan_in, fan_out), jnp.float32, -bound, bound)
        b = jax.random.uniform(kb, (1, fan_out), jnp.float32, -bound, bound)
        return w, b

    k1, k2, k3 = jax.random.split(key, 3)
    w1, b1 = linear(k1, input_dim, H1)
    w2, b2 = linear(k2, H1, H2)
    w3, b3 = linear(k3, H2, num_classes)
    return {"w1": w1, "b1": b1, "w2": w2, "b2": b2, "w3": w3, "b3": b3}


def _reference_forward(x, p):
    hp = jax.lax.Precision.HIGHEST
    h1 = jnp.maximum(jnp.dot(x, p["w1"], precision=hp) + p["b1"], 0.0)
    h2 = jnp.maximum(jnp.dot(h1, p["w2"], precision=hp) + p["b2"], 0.0)
    return jnp.dot(h2, p["w3"], precision=hp) + p["b3"]


if __name__ == "__main__":
    key = jax.random.PRNGKey(0)
    k_x, k_p = jax.random.split(key)

    batch, input_dim, num_classes = 8, 3, 11  # e.g. RGB -> 11 colour names
    x = jax.random.uniform(k_x, (batch, input_dim), jnp.float32)
    params = init_params(k_p, input_dim, num_classes)

    out = jax.block_until_ready(color_classifier_forward(x, params))
    ref = _reference_forward(x, params)
    assert out.shape == (batch, num_classes)
    assert jnp.allclose(out, ref, atol=1e-5, rtol=1e-5)

    # Ragged batch through the multi-step grid path (even step count, tiled
    # lane-axis batch, padded columns discarded).
    big_batch = 2500
    xb = jax.random.uniform(jax.random.PRNGKey(1), (big_batch, input_dim),
                            jnp.float32)
    outb = jax.block_until_ready(
        color_classifier_forward(xb, params, batch_tile=512))
    refb = _reference_forward(xb, params)
    assert outb.shape == (big_batch, num_classes)
    assert jnp.allclose(outb, refb, atol=1e-5, rtol=1e-5)

    # Default (single-step, large-tile) path on the bigger batch as well.
    outb2 = jax.block_until_ready(color_classifier_forward(xb, params))
    assert jnp.allclose(outb2, refb, atol=1e-5, rtol=1e-5)

    print("KERNEL_OK")
</pallas_src>

<mosaic_0001>
module attributes {stable_mosaic.version = 11 : i64} {
  func.func @kernel(%arg0: i32, %arg1: memref<8x128xf32, #tpu.memory_space<vmem>>, %arg2: memref<112x128xf32, #tpu.memory_space<vmem>>, %arg3: memref<16x128xf32, #tpu.memory_space<vmem>>) attributes {dimension_semantics = [#tpu.dimension_semantics<parallel>], iteration_bounds = array<i64: 1>, scalar_prefetch = 0 : i64, scratch_operands = 0 : i64, tpu.core_type = #tpu.core_type<tc>, window_params = [{transform_indices = @transform_0, window_bounds = array<i64: 8, 128>}, {pipeline_mode = #tpu.pipeline_mode<synchronous>, transform_indices = @transform_1, window_bounds = array<i64: 112, 128>}, {transform_indices = @transform_2, window_bounds = array<i64: 16, 128>}]} {
    %c0 = arith.constant 0 : index
    %c0_0 = arith.constant 0 : index
    %0 = vector.load %arg1[%c0, %c0_0] : memref<8x128xf32, #tpu.memory_space<vmem>>, vector<8x128xf32>
    %c0_1 = arith.constant 0 : index
    %c0_2 = arith.constant 0 : index
    %1 = vector.load %arg2[%c0_1, %c0_2] : memref<112x128xf32, #tpu.memory_space<vmem>>, vector<64x8xf32>
    %c0_3 = arith.constant 0 : index
    %c127 = arith.constant 127 : index
    %2 = vector.load %arg2[%c0_3, %c127] : memref<112x128xf32, #tpu.memory_space<vmem>>, vector<64x1xf32>
    %cst = arith.constant dense<0.000000e+00> : vector<64x128xf32>
    %3 = tpu.matmul %1, %0, %cst {dimension_numbers = #tpu.dot_dimension_numbers<[1], [0], [0], [1], [0, 0, 1, 1], [], []>} : vector<64x8xf32>, vector<8x128xf32>, vector<64x128xf32> -> vector<64x128xf32>
    %4 = vector.broadcast %2 : vector<64x1xf32> to vector<64x128xf32>
    %5 = arith.addf %3, %4 : vector<64x128xf32>
    %cst_4 = arith.constant 0.000000e+00 : f32
    %6 = vector.broadcast %cst_4 : f32 to vector<64x128xf32>
    %7 = arith.maximumf %5, %6 : vector<64x128xf32>
    %c64 = arith.constant 64 : index
    %c0_5 = arith.constant 0 : index
    %8 = vector.load %arg2[%c64, %c0_5] : memref<112x128xf32, #tpu.memory_space<vmem>>, vector<32x64xf32>
    %c64_6 = arith.constant 64 : index
    %c127_7 = arith.constant 127 : index
    %9 = vector.load %arg2[%c64_6, %c127_7] : memref<112x128xf32, #tpu.memory_space<vmem>>, vector<32x1xf32>
    %cst_8 = arith.constant dense<0.000000e+00> : vector<32x128xf32>
    %10 = tpu.matmul %8, %7, %cst_8 {dimension_numbers = #tpu.dot_dimension_numbers<[1], [0], [0], [1], [0, 0, 1, 1], [], []>} : vector<32x64xf32>, vector<64x128xf32>, vector<32x128xf32> -> vector<32x128xf32>
    %11 = vector.broadcast %9 : vector<32x1xf32> to vector<32x128xf32>
    %12 = arith.addf %10, %11 : vector<32x128xf32>
    %cst_9 = arith.constant 0.000000e+00 : f32
    %13 = vector.broadcast %cst_9 : f32 to vector<32x128xf32>
    %14 = arith.maximumf %12, %13 : vector<32x128xf32>
    %c96 = arith.constant 96 : index
    %c0_10 = arith.constant 0 : index
    %15 = vector.load %arg2[%c96, %c0_10] : memref<112x128xf32, #tpu.memory_space<vmem>>, vector<16x32xf32>
    %c96_11 = arith.constant 96 : index
    %c127_12 = arith.constant 127 : index
    %16 = vector.load %arg2[%c96_11, %c127_12] : memref<112x128xf32, #tpu.memory_space<vmem>>, vector<16x1xf32>
    %cst_13 = arith.constant dense<0.000000e+00> : vector<16x128xf32>
    %17 = tpu.matmul %15, %14, %cst_13 {dimension_numbers = #tpu.dot_dimension_numbers<[1], [0], [0], [1], [0, 0, 1, 1], [], []>} : vector<16x32xf32>, vector<32x128xf32>, vector<16x128xf32> -> vector<16x128xf32>
    %18 = vector.broadcast %16 : vector<16x1xf32> to vector<16x128xf32>
    %19 = arith.addf %17, %18 : vector<16x128xf32>
    %c0_14 = arith.constant 0 : index
    %c0_15 = arith.constant 0 : index
    %20 = vector.load %arg3[%c0_14, %c0_15] : memref<16x128xf32, #tpu.memory_space<vmem>>, vector<16x128xf32>
    tpu.vector_store %arg3[%c0_14, %c0_15], %19 {strides = array<i32>} : memref<16x128xf32, #tpu.memory_space<vmem>>, vector<16x128xf32>,
    return
  }
  func.func @transform_0(%arg0: i32) -> (i32, i32) {
    %c0_i32 = arith.constant 0 : i32
    %c0_i32_0 = arith.constant 0 : i32
    return %c0_i32, %arg0 : i32, i32
  }
  func.func @transform_1(%arg0: i32) -> (i32, i32) {
    %c0_i32 = arith.constant 0 : i32
    %c0_i32_0 = arith.constant 0 : i32
    %c0_i32_1 = arith.constant 0 : i32
    return %c0_i32, %c0_i32_0 : i32, i32
  }
  func.func @transform_2(%arg0: i32) -> (i32, i32) {
    %c0_i32 = arith.constant 0 : i32
    %c0_i32_0 = arith.constant 0 : i32
    return %c0_i32, %arg0 : i32, i32
  }
}

</mosaic_0001>

<bundles_post_ra>
// kernel: _forward_impl.1
= control target key start
LH: loop header
LB: loop body
LE: loop exit
PB: predicated region body
PF: predicated region fallthrough
CT: control target
= control target key end

     0   :  { %v265_v0 = vmov 127   ;;  %vm60_vm0 = vcmask 64512   ;;  %vm150_vm1 = vcmask 523264   ;;  %vm204_vm2 = vcmask 261120   ;;  %s356_s1 = inlined_call_operand.vmem [shape: f32[112,128], index: 1, kind: input, shape index: {}]   ;;  %s357_s0 = inlined_call_operand.vmem [shape: f32[8,128], index: 0, kind: input, shape index: {}]   ;;  %s358_s2 = inlined_call_operand.vmem [shape: f32[16,128], index: 2, kind: output, shape index: {}]  }
   0x1   :  { %263 = vset.pattern.permute.xlu1 %v265_v0  ;;  %262 = vset.pattern.permute.xlu0 %v265_v0  ;;  %v19_v1 = vld [vmem:[%s356_s1 + $0x38] sm:$0xff]  ;;  %v17_v2 = vld [vmem:[%s356_s1 + $0x28] sm:$0xff]  ;;  %v11_v3 = vld [vmem:[%s357_s0] sm:$0xff] }
   0x2   :  { %57 = vperm.xlu0 %262, %v19_v1   ;;  %47 = vperm.xlu1 %263, %v17_v2   ;;  %v12_v4 = vld [vmem:[%s356_s1] sm:$0xff]  ;;  %v15_v5 = vld [vmem:[%s356_s1 + $0x18] sm:$0xff]  ;;  %v18_v6 = vld [vmem:[%s356_s1 + $0x30] sm:$0xff] }
   0x3   :  { %92 = vmatpush.msra.mxu0 %v11_v3  ;;  %252 = vmatpush.msra.mxu3 %v11_v3  ;;  %v16_v7 = vld [vmem:[%s356_s1 + $0x20] sm:$0xff]  ;;  %v13_v8 = vld [vmem:[%s356_s1 + $0x8] sm:$0xff]  ;;  %v14_v9 = vld [vmem:[%s356_s1 + $0x10] sm:$0xff] }
   0x4   :  { %238 = vmatmul.msk.f32.vlgmr.msra.gmra.mxu0 %vm60_vm0, %v12_v4  ;;  %243 = vmatmul.msk.f32.vlgmr.msra.gmra.mxu3 %vm60_vm0, %v17_v2  ;;  %v315_v10 = vld [vmem:[%s356_s1 + $0x58] sm:$0xff]  ;;  %v323_v11 = vld [vmem:[%s356_s1 + $0x50] sm:$0xff]  ;;  %v127_v12 = vld [vmem:[%s356_s1 + $0x48] sm:$0xff] }
   0x5   :  { %264 = vset.pattern.permute.xlu2 %v265_v0  ;;  %v126_v13 = vld [vmem:[%s356_s1 + $0x40] sm:$0xff]  ;;  %v341_v15 = vld [vmem:[%s356_s1 + $0x68] sm:$0xff] }
   0x6   :  { %37 = vperm.xlu2 %264, %v15_v5   ;;  %v336_v14 = vld [vmem:[%s356_s1 + $0x60] sm:$0xff] }
   0xa   :  { %52 = vperm.xlu0 %262, %v18_v6   ;;  %42 = vperm.xlu1 %263, %v16_v7  }
   0xc   :  { %239 = vmatmul.msk.f32.gmra.mxu0 %vm60_vm0, %v13_v8  ;;  %244 = vmatmul.msk.f32.gmra.mxu3 %vm60_vm0, %v18_v6 }
   0xe   :  { %32 = vperm.xlu2 %264, %v14_v9  }
  0x12   :  { %27 = vperm.xlu0 %262, %v13_v8   ;;  %22 = vperm.xlu1 %263, %v12_v4  }
  0x14   :  { %240 = vmatmul.msk.f32.gmra.mxu0 %vm60_vm0, %v14_v9  ;;  %245 = vmatmul.msk.f32.gmra.mxu3 %vm60_vm0, %v19_v1 }
  0x16   :  { %147 = vperm.xlu2 %264, %v315_v10  }
  0x1a   :  { %142 = vperm.xlu0 %262, %v323_v11   ;;  %137 = vperm.xlu1 %263, %v127_v12  }
  0x1c   :  { %241 = vmatmul.msk.f32.gmra.mxu0 %vm60_vm0, %v15_v5 }
  0x1e   :  { %132 = vperm.xlu2 %264, %v126_v13  }
  0x22   :  { %196 = vperm.xlu0 %262, %v336_v14   ;;  %201 = vperm.xlu1 %263, %v341_v15  }
  0x24   :  { %242 = vmatmul.msk.f32.gmra.mxu0 %vm60_vm0, %v16_v7 }
  0x60   :  { %v38_v27 = vpop.permute.xlu2 %37 }
  0x68   :  { %v33_v37 = vpop.permute.xlu2 %32 }
  0x70   :  { %v148_v49 = vpop.permute.xlu2 %147 }
  0x74   :  { %v58_v19 = vpop.permute.xlu0 %57  ;;  %v48_v21 = vpop.permute.xlu1 %47 }
  0x78   :  { %v133_v59 = vpop.permute.xlu2 %132 }
  0x7c   :  { %v53_v23 = vpop.permute.xlu0 %52  ;;  %v43_v31 = vpop.permute.xlu1 %42 }
  0x81   :  { %v94_v16 = vpop.f32.mrf.mxu0 }
  0x84   :  { %v28_v40 = vpop.permute.xlu0 %27  ;;  %v23_v41 = vpop.permute.xlu1 %22 }
  0x85   :  { %v95_v44 = vadd.f32 %v94_v16, %v23_v41 }
  0x87   :  { %v109_v17 = vpop.f32.mrf.mxu3  ;;  %v118_v47 = vmax.f32 %v95_v44, 0.0 }
  0x88   :  { %v110_v29 = vadd.f32 %v109_v17, %v48_v21 }
  0x89   :  { %v97_v18 = vpop.f32.mrf.mxu0 }
  0x8a   :  { %v123_v33 = vmax.f32 %v110_v29, 0.0  ;;  %v98_v42 = vadd.f32 %v97_v18, %v28_v40 }
  0x8c   :  { %v119_v46 = vmax.f32 %v98_v42, 0.0  ;;  %v143_v54 = vpop.permute.xlu0 %142  ;;  %v138_v55 = vpop.permute.xlu1 %137 }
  0x8f   :  { %v112_v20 = vpop.f32.mrf.mxu3 }
  0x90   :  { %v113_v25 = vadd.f32 %v112_v20, %v53_v23 }
  0x91   :  { %v100_v22 = vpop.f32.mrf.mxu0 }
  0x92   :  { %v124_v32 = vmax.f32 %v113_v25, 0.0  ;;  %v101_v38 = vadd.f32 %v100_v22, %v33_v37 }
  0x94   :  { %v120_v45 = vmax.f32 %v101_v38, 0.0  ;;  %v197_v0 = vpop.permute.xlu0 %196  ;;  %v202_v3 = vpop.permute.xlu1 %201 }
  0x97   :  { %v115_v24 = vpop.f32.mrf.mxu3 }
  0x98   :  { %v116_v26 = vadd.f32 %v115_v24, %v58_v19 }
  0x99   :  { %v103_v28 = vpop.f32.mrf.mxu0 }
  0x9a   :  { %v125_v30 = vmax.f32 %v116_v26, 0.0  ;;  %v104_v35 = vadd.f32 %v103_v28, %v38_v27 }
  0x9c   :  { %167 = vmatpush.msra.mxu1 %v125_v30  ;;  %253 = vmatpush.msra.mxu2 %v125_v30  ;;  %v121_v43 = vmax.f32 %v104_v35, 0.0 }
  0x9e   :  { %168 = vmatpush.msra.mxu1 %v124_v32  ;;  %254 = vmatpush.msra.mxu2 %v124_v32 }
  0xa0   :  { %169 = vmatpush.msra.mxu1 %v123_v33  ;;  %255 = vmatpush.msra.mxu2 %v123_v33 }
  0xa1   :  { %v106_v34 = vpop.f32.mrf.mxu0 }
  0xa2   :  { %v107_v36 = vadd.f32 %v106_v34, %v43_v31 }
  0xa4   :  { %v122_v39 = vmax.f32 %v107_v36, 0.0 }
  0xa6   :  { %170 = vmatpush.msra.mxu1 %v122_v39  ;;  %256 = vmatpush.msra.mxu2 %v122_v39 }
  0xa8   :  { %171 = vmatpush.msra.mxu1 %v121_v43  ;;  %257 = vmatpush.msra.mxu2 %v121_v43 }
  0xaa   :  { %172 = vmatpush.msra.mxu1 %v120_v45  ;;  %258 = vmatpush.msra.mxu2 %v120_v45 }
  0xac   :  { %173 = vmatpush.msra.mxu1 %v119_v46  ;;  %259 = vmatpush.msra.mxu2 %v119_v46 }
  0xae   :  { %174 = vmatpush.msra.mxu1 %v118_v47  ;;  %260 = vmatpush.msra.mxu2 %v118_v47 }
  0xaf   :  { %246 = vmatmul.msk.f32.vlgmr.msra.gmra.mxu1 %vm150_vm1, %v126_v13  ;;  %249 = vmatmul.msk.f32.vlgmr.msra.gmra.mxu2 %vm150_vm1, %v315_v10 }
  0xb7   :  { %247 = vmatmul.msk.f32.gmra.mxu1 %vm150_vm1, %v127_v12 }
  0xbf   :  { %248 = vmatmul.msk.f32.gmra.mxu1 %vm150_vm1, %v323_v11 }
 0x12c   :  { %v176_v48 = vpop.f32.mrf.mxu1 }
 0x12d   :  { %v177_v60 = vadd.f32 %v176_v48, %v133_v59 }
 0x12f   :  { %v188_v63 = vmax.f32 %v177_v60, 0.0 }
 0x132   :  { %v185_v50 = vpop.f32.mrf.mxu2 }
 0x133   :  { %v186_v51 = vadd.f32 %v185_v50, %v148_v49 }
 0x134   :  { %v179_v52 = vpop.f32.mrf.mxu1 }
 0x135   :  { %v191_v53 = vmax.f32 %v186_v51, 0.0  ;;  %v180_v57 = vadd.f32 %v179_v52, %v138_v55 }
 0x137   :  { %221 = vmatpush.msrb.mxu2 %v191_v53  ;;  %v189_v62 = vmax.f32 %v180_v57, 0.0 }
 0x13c   :  { %v182_v56 = vpop.f32.mrf.mxu1 }
 0x13d   :  { %v183_v58 = vadd.f32 %v182_v56, %v143_v54 }
 0x13f   :  { %v190_v61 = vmax.f32 %v183_v58, 0.0 }
 0x141   :  { %222 = vmatpush.msrb.mxu2 %v190_v61 }
 0x143   :  { %223 = vmatpush.msrb.mxu2 %v189_v62 }
 0x145   :  { %224 = vmatpush.msrb.mxu2 %v188_v63 }
 0x146   :  { %250 = vmatmul.msk.f32.vlgmr.msrb.gmra.mxu2 %vm204_vm2, %v336_v14 }
 0x14e   :  { %251 = vmatmul.msk.f32.gmra.mxu2 %vm204_vm2, %v341_v15 }
 0x1c9   :  { %v226_v1 = vpop.f32.mrf.mxu2 }
 0x1ca   :  { %v227_v2 = vadd.f32 %v226_v1, %v197_v0 }
 0x1cc   :  { %232 = vst [vmem:[%s358_s2] sm:$0xff] %v227_v2 }
 0x1d1   :  { %v229_v4 = vpop.f32.mrf.mxu2 }
 0x1d2   :  { %v230_v5 = vadd.f32 %v229_v4, %v202_v3 }
 0x1d4   :  { %233 = vst [vmem:[%s358_s2 + $0x8] sm:$0xff] %v230_v5 }

</bundles_post_ra>
